<compile_context>
chip_gen: v6e
topology: v6e:2x2x1
jax: 0.10.0
libtpu: 0.0.40
codegen_flags: <defaults>
</compile_context>

<pallas_src>
import math

import jax
import jax.numpy as jnp
from jax.experimental import pallas as pl
from jax.experimental.pallas import tpu as pltpu


def _downsample_kernel(x_ref, w_ref, b_ref, o_ref):
    # x_ref : (nb, 2*(Ho+1), Wo+1, 2C)   row-parity-deinterleaved, column pairs
    #                                     packed on the lane dim.
    # w_ref : (3, 2, 2C, C)   w[kh, 0] = [w(kh,0); w(kh,1)]  -> pair j = wo
    #                         w[kh, 1] = [w(kh,2); zeros  ]  -> pair j = wo+1
    # b_ref : (1, C)
    # o_ref : (nb, Ho*Wo, C)
    nb, hp2, wp1, c2 = x_ref.shape
    hp1 = hp2 // 2          # Ho + 1
    ho = hp1 - 1
    wo = wp1 - 1
    c = o_ref.shape[2]
    m = nb * ho * wo

    # Accumulator starts as the (1, C) bias; it broadcasts to (M, C) on the
    # first matmul add, saving a separate full-tile bias add.
    acc = b_ref[...].astype(jnp.float32)

    # 3 kernel rows; each contributes two K=2C matmuls over contiguous slices
    # read directly from the VMEM ref (short live ranges, no big value slices).
    for kh in range(3):
        ph = kh & 1          # row parity plane
        dh = kh >> 1         # row offset inside the plane (0, 0, 1)
        r0 = ph * hp1 + dh
        pa = x_ref[:, r0:r0 + ho, 0:wo, :].reshape(m, c2)       # cols (2wo,   2wo+1)
        pb = x_ref[:, r0:r0 + ho, 1:wo + 1, :].reshape(m, c2)   # cols (2wo+2, 2wo+3)
        acc = acc + jnp.dot(pa, w_ref[kh, 0], preferred_element_type=jnp.float32)
        acc = acc + jnp.dot(pb, w_ref[kh, 1], preferred_element_type=jnp.float32)

    o_ref[...] = acc.reshape(nb, ho * wo, c).astype(o_ref.dtype)


def _pick_nb(n, ho, wo, c, itemsize, vmem_budget=24 * 1024 * 1024):
    """Images per grid step: fill the VMEM budget (accounting for double
    buffering and the resident packed weights), divide N evenly, and keep the
    grid >= 2 so both TensorCores get work."""
    w_bytes = 2 * (3 * 2 * 2 * c * c + c) * itemsize          # double-buffered weights+bias
    per_image = (2 * (ho + 1) * (wo + 1) * 2 * c + ho * wo * c) * itemsize
    avail = max(vmem_budget - w_bytes, 2 * per_image)
    nb = max(1, min(n, avail // (2 * max(per_image, 1))))     # 2x for double buffering
    while nb > 1 and (n % nb != 0 or n // nb < 2):
        nb -= 1
    return int(nb)


def downsample(x, weight, bias, temb=None):
    """x: [T, B, C, H, W]; weight: [Cout, Cin, 3, 3] (PyTorch OIHW); bias: [Cout].

    temb is ignored, matching the PyTorch forward (idem=False path).
    Returns [T, B, C, Ho, Wo] with Ho = (H+1)//2, Wo = (W+1)//2.
    """
    T, B, C, H, W = x.shape
    N = T * B
    Ho = (H + 2 - 3) // 2 + 1
    Wo = (W + 2 - 3) // 2 + 1
    Hp2 = 2 * (Ho + 1)      # padded, rounded to even
    Wp2 = 2 * (Wo + 1)

    itemsize = jnp.dtype(x.dtype).itemsize
    nb = _pick_nb(N, Ho, Wo, C, itemsize)

    # --- wrapper-side layout glue (one pad + one transpose) ---------------
    # Pad in NCHW (extra bottom/right zeros beyond the standard 1-pad are
    # either never read or hit zeroed weight rows), then deinterleave row
    # parity and pack column pairs onto the lane dim in a single transpose.
    xn = x.reshape(N, C, H, W)
    xp = jnp.pad(xn, ((0, 0), (0, 0), (1, Hp2 - 1 - H), (1, Wp2 - 1 - W)))
    xr = (
        xp.reshape(N, C, Ho + 1, 2, Wo + 1, 2)
        .transpose(0, 3, 2, 4, 5, 1)                 # (N, r, i, j, s, C)
        .reshape(N, 2 * (Ho + 1), Wo + 1, 2 * C)     # merge (r,i) and (s,C)
    )

    # Weights: OIHW -> (kh, kw, Cin, Cout), then pack per-kh column-pair mats
    # into one (3, 2, 2C, C) tensor (single resident weight stream).
    w_hwio = jnp.transpose(weight, (2, 3, 1, 0))     # (3, 3, Cin, Cout)
    wa = jnp.concatenate([w_hwio[:, 0], w_hwio[:, 1]], axis=1)          # (3, 2C, C)
    wb = jnp.concatenate(
        [w_hwio[:, 2], jnp.zeros((3, C, C), w_hwio.dtype)], axis=1)     # (3, 2C, C)
    w_pk = jnp.stack([wa, wb], axis=1)                                  # (3, 2, 2C, C)
    b2 = bias.reshape(1, C)

    out_flat = pl.pallas_call(
        _downsample_kernel,
        out_shape=jax.ShapeDtypeStruct((N, Ho * Wo, C), x.dtype),
        grid_spec=pltpu.PrefetchScalarGridSpec(
            num_scalar_prefetch=0,
            grid=(N // nb,),
            in_specs=[
                pl.BlockSpec((nb, 2 * (Ho + 1), Wo + 1, 2 * C),
                             lambda n: (n, 0, 0, 0)),
                pl.BlockSpec((3, 2, 2 * C, C), lambda n: (0, 0, 0, 0)),
                pl.BlockSpec((1, C), lambda n: (0, 0)),
            ],
            out_specs=pl.BlockSpec((nb, Ho * Wo, C), lambda n: (n, 0, 0)),
        ),
        compiler_params=pltpu.CompilerParams(
            dimension_semantics=("parallel",),
            vmem_limit_bytes=32 * 1024 * 1024,
        ),
    )(xr, w_pk, b2)

    # NHWC(flattened) -> NCHW and restore the [T, B, ...] leading dims.
    return (
        out_flat.reshape(N, Ho, Wo, C)
        .transpose(0, 3, 1, 2)
        .reshape(T, B, C, Ho, Wo)
    )


if __name__ == "__main__":
    key = jax.random.PRNGKey(0)
    kx, kw = jax.random.split(key)

    # Small shapes consistent with the module: [T, B, C, H, W]
    T, B, C, H, W = 2, 2, 4, 16, 16
    x = jax.random.normal(kx, (T, B, C, H, W), jnp.float32)
    temb = jnp.zeros((T, B, 32), jnp.float32)  # unused, like in PyTorch forward

    # Deterministic parameter init (matches nn.init.xavier_uniform_ / zeros_).
    fan_in = C * 3 * 3
    fan_out = C * 3 * 3
    bound = math.sqrt(6.0 / (fan_in + fan_out))
    weight = jax.random.uniform(kw, (C, C, 3, 3), jnp.float32, -bound, bound)
    bias = jnp.zeros((C,), jnp.float32)

    out = downsample(x, weight, bias, temb)
    out = jax.block_until_ready(out)

    # Reference check against XLA's conv.
    Ho, Wo = (H + 1) // 2, (W + 1) // 2
    ref = jax.lax.conv_general_dilated(
        x.reshape(T * B, C, H, W),
        weight,
        window_strides=(2, 2),
        padding=((1, 1), (1, 1)),
        dimension_numbers=("NCHW", "OIHW", "NCHW"),
    ) + bias.reshape(1, C, 1, 1)
    ref = ref.reshape(T, B, C, Ho, Wo)

    assert out.shape == (T, B, C, Ho, Wo), out.shape
    assert jnp.allclose(out, ref, atol=1e-4, rtol=1e-4), "mismatch vs reference conv"
    print("KERNEL_OK")
</pallas_src>

<mosaic_0001>
module attributes {stable_mosaic.version = 11 : i64} {
  func.func @_downsample_kernel(%arg0: i32, %arg1: memref<2x18x9x8xf32, #tpu.memory_space<vmem>>, %arg2: memref<3x2x8x4xf32, #tpu.memory_space<vmem>>, %arg3: memref<1x4xf32, #tpu.memory_space<vmem>>, %arg4: memref<2x64x4xf32, #tpu.memory_space<vmem>>) attributes {dimension_semantics = [#tpu.dimension_semantics<parallel>], iteration_bounds = array<i64: 2>, scalar_prefetch = 0 : i64, scratch_operands = 0 : i64, tpu.core_type = #tpu.core_type<tc>, window_params = [{transform_indices = @transform_0, window_bounds = array<i64: 2, 18, 9, 8>}, {pipeline_mode = #tpu.pipeline_mode<synchronous>, transform_indices = @transform_1, window_bounds = array<i64: 3, 2, 8, 4>}, {pipeline_mode = #tpu.pipeline_mode<synchronous>, transform_indices = @transform_2, window_bounds = array<i64: 1, 4>}, {transform_indices = @transform_3, window_bounds = array<i64: 2, 64, 4>}]} {
    %c0 = arith.constant 0 : index
    %c0_0 = arith.constant 0 : index
    %0 = vector.load %arg3[%c0, %c0_0] : memref<1x4xf32, #tpu.memory_space<vmem>>, vector<1x4xf32>
    %c0_1 = arith.constant 0 : index
    %c0_2 = arith.constant 0 : index
    %c0_3 = arith.constant 0 : index
    %c0_4 = arith.constant 0 : index
    %1 = vector.load %arg1[%c0_1, %c0_2, %c0_3, %c0_4] : memref<2x18x9x8xf32, #tpu.memory_space<vmem>>, vector<2x8x8x8xf32>
    %2 = vector.shape_cast %1 : vector<2x8x8x8xf32> to vector<128x8xf32>
    %c0_5 = arith.constant 0 : index
    %c0_6 = arith.constant 0 : index
    %c1 = arith.constant 1 : index
    %c0_7 = arith.constant 0 : index
    %3 = vector.load %arg1[%c0_5, %c0_6, %c1, %c0_7] : memref<2x18x9x8xf32, #tpu.memory_space<vmem>>, vector<2x8x8x8xf32>
    %4 = vector.shape_cast %3 : vector<2x8x8x8xf32> to vector<128x8xf32>
    %c0_8 = arith.constant 0 : index
    %c0_9 = arith.constant 0 : index
    %c0_10 = arith.constant 0 : index
    %c0_11 = arith.constant 0 : index
    %5 = vector.load %arg2[%c0_8, %c0_9, %c0_10, %c0_11] : memref<3x2x8x4xf32, #tpu.memory_space<vmem>>, vector<1x1x8x4xf32>
    %6 = vector.shape_cast %5 : vector<1x1x8x4xf32> to vector<8x4xf32>
    %cst = arith.constant dense<0.000000e+00> : vector<128x4xf32>
    %7 = tpu.matmul %2, %6, %cst {dimension_numbers = #tpu.dot_dimension_numbers<[1], [0], [0], [1], [0, 0, 1, 1], [], []>} : vector<128x8xf32>, vector<8x4xf32>, vector<128x4xf32> -> vector<128x4xf32>
    %8 = vector.broadcast %0 : vector<1x4xf32> to vector<128x4xf32>
    %9 = arith.addf %8, %7 : vector<128x4xf32>
    %c0_12 = arith.constant 0 : index
    %c1_13 = arith.constant 1 : index
    %c0_14 = arith.constant 0 : index
    %c0_15 = arith.constant 0 : index
    %10 = vector.load %arg2[%c0_12, %c1_13, %c0_14, %c0_15] : memref<3x2x8x4xf32, #tpu.memory_space<vmem>>, vector<1x1x8x4xf32>
    %11 = vector.shape_cast %10 : vector<1x1x8x4xf32> to vector<8x4xf32>
    %cst_16 = arith.constant dense<0.000000e+00> : vector<128x4xf32>
    %12 = tpu.matmul %4, %11, %cst_16 {dimension_numbers = #tpu.dot_dimension_numbers<[1], [0], [0], [1], [0, 0, 1, 1], [], []>} : vector<128x8xf32>, vector<8x4xf32>, vector<128x4xf32> -> vector<128x4xf32>
    %13 = arith.addf %9, %12 : vector<128x4xf32>
    %c0_17 = arith.constant 0 : index
    %c9 = arith.constant 9 : index
    %c0_18 = arith.constant 0 : index
    %c0_19 = arith.constant 0 : index
    %14 = vector.load %arg1[%c0_17, %c9, %c0_18, %c0_19] : memref<2x18x9x8xf32, #tpu.memory_space<vmem>>, vector<2x8x8x8xf32>
    %15 = vector.shape_cast %14 : vector<2x8x8x8xf32> to vector<128x8xf32>
    %c0_20 = arith.constant 0 : index
    %c9_21 = arith.constant 9 : index
    %c1_22 = arith.constant 1 : index
    %c0_23 = arith.constant 0 : index
    %16 = vector.load %arg1[%c0_20, %c9_21, %c1_22, %c0_23] : memref<2x18x9x8xf32, #tpu.memory_space<vmem>>, vector<2x8x8x8xf32>
    %17 = vector.shape_cast %16 : vector<2x8x8x8xf32> to vector<128x8xf32>
    %c1_24 = arith.constant 1 : index
    %c0_25 = arith.constant 0 : index
    %c0_26 = arith.constant 0 : index
    %c0_27 = arith.constant 0 : index
    %18 = vector.load %arg2[%c1_24, %c0_25, %c0_26, %c0_27] : memref<3x2x8x4xf32, #tpu.memory_space<vmem>>, vector<1x1x8x4xf32>
    %19 = vector.shape_cast %18 : vector<1x1x8x4xf32> to vector<8x4xf32>
    %cst_28 = arith.constant dense<0.000000e+00> : vector<128x4xf32>
    %20 = tpu.matmul %15, %19, %cst_28 {dimension_numbers = #tpu.dot_dimension_numbers<[1], [0], [0], [1], [0, 0, 1, 1], [], []>} : vector<128x8xf32>, vector<8x4xf32>, vector<128x4xf32> -> vector<128x4xf32>
    %21 = arith.addf %13, %20 : vector<128x4xf32>
    %c1_29 = arith.constant 1 : index
    %c1_30 = arith.constant 1 : index
    %c0_31 = arith.constant 0 : index
    %c0_32 = arith.constant 0 : index
    %22 = vector.load %arg2[%c1_29, %c1_30, %c0_31, %c0_32] : memref<3x2x8x4xf32, #tpu.memory_space<vmem>>, vector<1x1x8x4xf32>
    %23 = vector.shape_cast %22 : vector<1x1x8x4xf32> to vector<8x4xf32>
    %cst_33 = arith.constant dense<0.000000e+00> : vector<128x4xf32>
    %24 = tpu.matmul %17, %23, %cst_33 {dimension_numbers = #tpu.dot_dimension_numbers<[1], [0], [0], [1], [0, 0, 1, 1], [], []>} : vector<128x8xf32>, vector<8x4xf32>, vector<128x4xf32> -> vector<128x4xf32>
    %25 = arith.addf %21, %24 : vector<128x4xf32>
    %c0_34 = arith.constant 0 : index
    %c1_35 = arith.constant 1 : index
    %c0_36 = arith.constant 0 : index
    %c0_37 = arith.constant 0 : index
    %26 = vector.load %arg1[%c0_34, %c1_35, %c0_36, %c0_37] : memref<2x18x9x8xf32, #tpu.memory_space<vmem>>, vector<2x8x8x8xf32>
    %27 = vector.shape_cast %26 : vector<2x8x8x8xf32> to vector<128x8xf32>
    %c0_38 = arith.constant 0 : index
    %c1_39 = arith.constant 1 : index
    %c1_40 = arith.constant 1 : index
    %c0_41 = arith.constant 0 : index
    %28 = vector.load %arg1[%c0_38, %c1_39, %c1_40, %c0_41] : memref<2x18x9x8xf32, #tpu.memory_space<vmem>>, vector<2x8x8x8xf32>
    %29 = vector.shape_cast %28 : vector<2x8x8x8xf32> to vector<128x8xf32>
    %c2 = arith.constant 2 : index
    %c0_42 = arith.constant 0 : index
    %c0_43 = arith.constant 0 : index
    %c0_44 = arith.constant 0 : index
    %30 = vector.load %arg2[%c2, %c0_42, %c0_43, %c0_44] : memref<3x2x8x4xf32, #tpu.memory_space<vmem>>, vector<1x1x8x4xf32>
    %31 = vector.shape_cast %30 : vector<1x1x8x4xf32> to vector<8x4xf32>
    %cst_45 = arith.constant dense<0.000000e+00> : vector<128x4xf32>
    %32 = tpu.matmul %27, %31, %cst_45 {dimension_numbers = #tpu.dot_dimension_numbers<[1], [0], [0], [1], [0, 0, 1, 1], [], []>} : vector<128x8xf32>, vector<8x4xf32>, vector<128x4xf32> -> vector<128x4xf32>
    %33 = arith.addf %25, %32 : vector<128x4xf32>
    %c2_46 = arith.constant 2 : index
    %c1_47 = arith.constant 1 : index
    %c0_48 = arith.constant 0 : index
    %c0_49 = arith.constant 0 : index
    %34 = vector.load %arg2[%c2_46, %c1_47, %c0_48, %c0_49] : memref<3x2x8x4xf32, #tpu.memory_space<vmem>>, vector<1x1x8x4xf32>
    %35 = vector.shape_cast %34 : vector<1x1x8x4xf32> to vector<8x4xf32>
    %cst_50 = arith.constant dense<0.000000e+00> : vector<128x4xf32>
    %36 = tpu.matmul %29, %35, %cst_50 {dimension_numbers = #tpu.dot_dimension_numbers<[1], [0], [0], [1], [0, 0, 1, 1], [], []>} : vector<128x8xf32>, vector<8x4xf32>, vector<128x4xf32> -> vector<128x4xf32>
    %37 = arith.addf %33, %36 : vector<128x4xf32>
    %38 = vector.shape_cast %37 : vector<128x4xf32> to vector<2x64x4xf32>
    %c0_51 = arith.constant 0 : index
    %c0_52 = arith.constant 0 : index
    %c0_53 = arith.constant 0 : index
    %39 = vector.load %arg4[%c0_51, %c0_52, %c0_53] : memref<2x64x4xf32, #tpu.memory_space<vmem>>, vector<2x64x4xf32>
    tpu.vector_store %arg4[%c0_51, %c0_52, %c0_53], %38 {strides = array<i32>} : memref<2x64x4xf32, #tpu.memory_space<vmem>>, vector<2x64x4xf32>,
    return
  }
  func.func @transform_0(%arg0: i32) -> (i32, i32, i32, i32) {
    %c0_i32 = arith.constant 0 : i32
    %c0_i32_0 = arith.constant 0 : i32
    %c0_i32_1 = arith.constant 0 : i32
    %c0_i32_2 = arith.constant 0 : i32
    return %arg0, %c0_i32, %c0_i32_0, %c0_i32_1 : i32, i32, i32, i32
  }
  func.func @transform_1(%arg0: i32) -> (i32, i32, i32, i32) {
    %c0_i32 = arith.constant 0 : i32
    %c0_i32_0 = arith.constant 0 : i32
    %c0_i32_1 = arith.constant 0 : i32
    %c0_i32_2 = arith.constant 0 : i32
    %c0_i32_3 = arith.constant 0 : i32
    return %c0_i32, %c0_i32_0, %c0_i32_1, %c0_i32_2 : i32, i32, i32, i32
  }
  func.func @transform_2(%arg0: i32) -> (i32, i32) {
    %c0_i32 = arith.constant 0 : i32
    %c0_i32_0 = arith.constant 0 : i32
    %c0_i32_1 = arith.constant 0 : i32
    return %c0_i32, %c0_i32_0 : i32, i32
  }
  func.func @transform_3(%arg0: i32) -> (i32, i32, i32) {
    %c0_i32 = arith.constant 0 : i32
    %c0_i32_0 = arith.constant 0 : i32
    %c0_i32_1 = arith.constant 0 : i32
    return %arg0, %c0_i32, %c0_i32_0 : i32, i32, i32
  }
}

</mosaic_0001>

<bundles_post_ra>
// kernel: tpu_custom_call.1
= control target key start
LH: loop header
LB: loop body
LE: loop exit
PB: predicated region body
PF: predicated region fallthrough
CT: control target
= control target key end

     0   :  { %s2099_s12 = smov 0   ;;  %s2623_s0 = inlined_call_operand.vmem [shape: f32[4,18,9,8], index: 0, kind: input, shape index: {}]   ;;  %s2624_s1 = inlined_call_operand.vmem [shape: f32[3,2,8,4], index: 1, kind: input, shape index: {}]   ;;  %s2625_s2 = inlined_call_operand.vmem [shape: f32[1,4], index: 2, kind: input, shape index: {}]   ;;  %s2626_s3 = inlined_call_operand.vmem [shape: f32[4,64,4], index: 3, kind: output, shape index: {}]  }
   0x1 LB: > { %s1625_s13 = sadd.s32 4294967295, %s2077_s12   ;;  %p1629_p0 = scmp.ge.s32.totalorder %s2077_s12, 1  ;;  %s2077_s12 = sphi %s2099_s12, %s13_s12  }
   0x2   : > { %p139_p1 = scmp.lt.s32.totalorder %s2077_s12, 3 }
   0x4   : > { %p140_p2 = pnand %p1629_p0, %p139_p1 }
   0x6   : > { %143 = sbr.rel (%p140_p2) target bundleno = 312 (0x138), region = 32 }
   0xb   : > { %v212_v0 = vld [vmem:[%s2624_s1] sm:$0xff]  ;;  %v1652_v1 = vld [vmem:[%s2624_s1 + $0x8] sm:$0xff]  ;;  %s1630_s18 = sshll.u32 %s1625_s13, 1  ;;  %v1701_v2 = vld [vmem:[%s2624_s1 + $0x10] sm:$0xff]  ;;  %vm213_vm0 = vcmask 64512   ;;  %vm1550_vm1 = vcmask 31744  }
   0xc   : > { %1906 = vmatprep.subr.mxu0 %v212_v0  ;;  %1932 = vmatprep.subr.mxu1 %v1652_v1  ;;  %p166_p3 = scmp.lt.s32.totalorder %s1630_s18, 3  ;;  %v1718_v3 = vld [vmem:[%s2624_s1 + $0x18] sm:$0xff]  ;;  %v2150_v10 = vld [vmem:[%s2624_s1 + $0x20] sm:$0xff]  ;;  %v2155_v11 = vld [vmem:[%s2624_s1 + $0x28] sm:$0xff] }
   0xd   : > { %1907 = vmatpush3.msra.mxu0 %v212_v0  ;;  %1933 = vmatpush3.msra.mxu1 %v1652_v1 }
   0xe   : > { %s2644_s18 = smov (!%p166_p3, %s1630_s18), 3  ;;  %1958 = vmatprep.subr.mxu0 %v1701_v2  ;;  %1984 = vmatprep.subr.mxu1 %v1718_v3 }
   0xf   : > { %s2062_s23 = smul.u32 288, %s2644_s18  ;;  %s1803_s6 = sshll.u32 %s2644_s18, 6 }
  0x10   : > { %s2538_s9 = scalar_lea.vmem %s2626_s3, %s1803_s6 }
  0x11   : > { %s2125_s26 = scalar_lea.vmem %s2623_s0, %s2062_s23 }
  0x12   : > { %v180_v4 = vld [vmem:[%s2125_s26] sm:$0xff]  ;;  %v2130_v6 = vld [vmem:[%s2125_s26 + $0x10] sm:$0xff] }
  0x13   : > { %v196_v5 = vld [vmem:[%s2125_s26 + $0x1] sm:$0xff]  ;;  %1908 = vmatprep.mubr.msk.f32.mxu0 %vm213_vm0, %v180_v4  ;;  %v2135_v7 = vld [vmem:[%s2125_s26 + $0x11] sm:$0xff] }
  0x14   : > { %1934 = vmatprep.mubr.msk.f32.mxu1 %vm213_vm0, %v196_v5  ;;  %v2138_v8 = vld [vmem:[%s2125_s26 + $0x20] sm:$0xff]  ;;  %1909 = vmatmul.mubr.msk.f32.vlgmr.msra.gmra.mxu0 %vm213_vm0, %v2130_v6  ;;  %v2158_v12 = vld [vmem:[%s2125_s26 + $0x30] sm:$0xff] }
  0x15   : > { %v2141_v9 = vld [vmem:[%s2125_s26 + $0x21] sm:$0xff]  ;;  %1935 = vmatmul.mubr.msk.f32.vlgmr.msra.gmra.mxu1 %vm213_vm0, %v2135_v7  ;;  %1959 = vmatpush3.msra.mxu0 %v1701_v2  ;;  %v2161_v13 = vld [vmem:[%s2125_s26 + $0x31] sm:$0xff] }
  0x16   : > { %1985 = vmatpush3.msra.mxu1 %v1718_v3  ;;  %1911 = vmatprep.mubr.msk.f32.mxu0 %vm213_vm0, %v2138_v8  ;;  %v2168_v14 = vld [vmem:[%s2125_s26 + $0x40] sm:$0xff]  ;;  %v2184_v16 = vld [vmem:[%s2125_s26 + $0x50] sm:$0xff] }
  0x17   : > { %1937 = vmatprep.mubr.msk.f32.mxu1 %vm213_vm0, %v2141_v9  ;;  %v2171_v15 = vld [vmem:[%s2125_s26 + $0x41] sm:$0xff]  ;;  %2010 = vmatprep.subr.mxu0 %v2150_v10  ;;  %v2187_v17 = vld [vmem:[%s2125_s26 + $0x51] sm:$0xff] }
  0x18   : > { %2036 = vmatprep.subr.mxu1 %v2155_v11  ;;  %1912 = vmatmul.mubr.msk.f32.gmra.mxu0 %vm213_vm0, %v2158_v12  ;;  %v2190_v18 = vld [vmem:[%s2125_s26 + $0x60] sm:$0xff]  ;;  %v2204_v20 = vld [vmem:[%s2125_s26 + $0x70] sm:$0xff] }
  0x19   : > { %1938 = vmatmul.mubr.msk.f32.gmra.mxu1 %vm213_vm0, %v2161_v13  ;;  %1914 = vmatprep.mubr.msk.f32.mxu0 %vm213_vm0, %v2168_v14  ;;  %v2193_v19 = vld [vmem:[%s2125_s26 + $0x61] sm:$0xff]  ;;  %v2207_v21 = vld [vmem:[%s2125_s26 + $0x71] sm:$0xff] }
  0x1a   : > { %1940 = vmatprep.mubr.msk.f32.mxu1 %vm213_vm0, %v2171_v15  ;;  %v188_v22 = vld [vmem:[%s2125_s26 + $0x120] sm:$0xff]  ;;  %v2218_v24 = vld [vmem:[%s2125_s26 + $0x130] sm:$0xff] }
  0x1b   : > { %v204_v23 = vld [vmem:[%s2125_s26 + $0x121] sm:$0xff]  ;;  %v2221_v25 = vld [vmem:[%s2125_s26 + $0x131] sm:$0xff] }
  0x1c   : > { %1915 = vmatmul.mubr.msk.f32.gmra.mxu0 %vm213_vm0, %v2184_v16  ;;  %v2224_v26 = vld [vmem:[%s2125_s26 + $0x140] sm:$0xff]  ;;  %v2238_v28 = vld [vmem:[%s2125_s26 + $0x150] sm:$0xff] }
  0x1d   : > { %1941 = vmatmul.mubr.msk.f32.gmra.mxu1 %vm213_vm0, %v2187_v17  ;;  %1917 = vmatprep.mubr.msk.f32.mxu0 %vm213_vm0, %v2190_v18  ;;  %v2227_v27 = vld [vmem:[%s2125_s26 + $0x141] sm:$0xff]  ;;  %v2241_v29 = vld [vmem:[%s2125_s26 + $0x151] sm:$0xff] }
  0x1e   : > { %1943 = vmatprep.mubr.msk.f32.mxu1 %vm213_vm0, %v2193_v19  ;;  %v2244_v30 = vld [vmem:[%s2125_s26 + $0x160] sm:$0xff]  ;;  %v2258_v32 = vld [vmem:[%s2125_s26 + $0x170] sm:$0xff] }
  0x1f   : > { %v2247_v31 = vld [vmem:[%s2125_s26 + $0x161] sm:$0xff]  ;;  %v2261_v33 = vld [vmem:[%s2125_s26 + $0x171] sm:$0xff] }
  0x20   : > { %1918 = vmatmul.mubr.msk.f32.gmra.mxu0 %vm213_vm0, %v2204_v20  ;;  %v2264_v34 = vld [vmem:[%s2125_s26 + $0x180] sm:$0xff]  ;;  %v2278_v36 = vld [vmem:[%s2125_s26 + $0x190] sm:$0xff] }
  0x21   : > { %1944 = vmatmul.mubr.msk.f32.gmra.mxu1 %vm213_vm0, %v2207_v21  ;;  %1920 = vmatprep.mubr.msk.f32.mxu0 %vm213_vm0, %v188_v22  ;;  %v2267_v35 = vld [vmem:[%s2125_s26 + $0x181] sm:$0xff]  ;;  %v2281_v37 = vld [vmem:[%s2125_s26 + $0x191] sm:$0xff] }
  0x22   : > { %1946 = vmatprep.mubr.msk.f32.mxu1 %vm213_vm0, %v204_v23  ;;  %v1669_v38 = vld [vmem:[%s2125_s26 + $0x90] sm:$0xff]  ;;  %v1670_v40 = vld [vmem:[%s2125_s26 + $0xa0] sm:$0xff] }
  0x23   : > { %v1685_v39 = vld [vmem:[%s2125_s26 + $0x91] sm:$0xff]  ;;  %v1686_v41 = vld [vmem:[%s2125_s26 + $0xa1] sm:$0xff] }
  0x24   : > { %1921 = vmatmul.mubr.msk.f32.gmra.mxu0 %vm213_vm0, %v2218_v24  ;;  %v1671_v42 = vld [vmem:[%s2125_s26 + $0xb0] sm:$0xff]  ;;  %v1672_v44 = vld [vmem:[%s2125_s26 + $0xc0] sm:$0xff] }
  0x25   : > { %1947 = vmatmul.mubr.msk.f32.gmra.mxu1 %vm213_vm0, %v2221_v25  ;;  %1923 = vmatprep.mubr.msk.f32.mxu0 %vm213_vm0, %v2224_v26  ;;  %v1687_v43 = vld [vmem:[%s2125_s26 + $0xb1] sm:$0xff]  ;;  %v1688_v45 = vld [vmem:[%s2125_s26 + $0xc1] sm:$0xff] }
  0x26   : > { %1949 = vmatprep.mubr.msk.f32.mxu1 %vm213_vm0, %v2227_v27  ;;  %v1673_v46 = vld [vmem:[%s2125_s26 + $0xd0] sm:$0xff]  ;;  %v1674_v48 = vld [vmem:[%s2125_s26 + $0xe0] sm:$0xff] }
  0x27   : > { %v1689_v47 = vld [vmem:[%s2125_s26 + $0xd1] sm:$0xff]  ;;  %v1690_v49 = vld [vmem:[%s2125_s26 + $0xe1] sm:$0xff] }
  0x28   : > { %1924 = vmatmul.mubr.msk.f32.gmra.mxu0 %vm213_vm0, %v2238_v28  ;;  %v1675_v50 = vld [vmem:[%s2125_s26 + $0xf0] sm:$0xff]  ;;  %v1676_v52 = vld [vmem:[%s2125_s26 + $0x100] sm:$0xff] }
  0x29   : > { %1950 = vmatmul.mubr.msk.f32.gmra.mxu1 %vm213_vm0, %v2241_v29  ;;  %1926 = vmatprep.mubr.msk.f32.mxu0 %vm213_vm0, %v2244_v30  ;;  %v1691_v51 = vld [vmem:[%s2125_s26 + $0xf1] sm:$0xff]  ;;  %v1692_v53 = vld [vmem:[%s2125_s26 + $0x101] sm:$0xff] }
  0x2a   : > { %1952 = vmatprep.mubr.msk.f32.mxu1 %vm213_vm0, %v2247_v31  ;;  %v1677_v54 = vld [vmem:[%s2125_s26 + $0x1b0] sm:$0xff]  ;;  %v1678_v56 = vld [vmem:[%s2125_s26 + $0x1c0] sm:$0xff] }
  0x2b   : > { %v1693_v55 = vld [vmem:[%s2125_s26 + $0x1b1] sm:$0xff]  ;;  %v1694_v57 = vld [vmem:[%s2125_s26 + $0x1c1] sm:$0xff] }
  0x2c   : > { %1927 = vmatmul.mubr.msk.f32.gmra.mxu0 %vm213_vm0, %v2258_v32  ;;  %v1679_v58 = vld [vmem:[%s2125_s26 + $0x1d0] sm:$0xff]  ;;  %v1680_v60 = vld [vmem:[%s2125_s26 + $0x1e0] sm:$0xff] }
  0x2d   : > { %1953 = vmatmul.mubr.msk.f32.gmra.mxu1 %vm213_vm0, %v2261_v33  ;;  %1929 = vmatprep.mubr.msk.f32.mxu0 %vm213_vm0, %v2264_v34  ;;  %v1695_v59 = vld [vmem:[%s2125_s26 + $0x1d1] sm:$0xff]  ;;  %v1696_v61 = vld [vmem:[%s2125_s26 + $0x1e1] sm:$0xff] }
  0x2e   : > { %1955 = vmatprep.mubr.msk.f32.mxu1 %vm213_vm0, %v2267_v35  ;;  %v1681_v62 = vld [vmem:[%s2125_s26 + $0x1f0] sm:$0xff]  ;;  %v1682_v0 = vld [vmem:[%s2125_s26 + $0x200] sm:$0xff] }
  0x2f   : > { %v1697_v63 = vld [vmem:[%s2125_s26 + $0x1f1] sm:$0xff]  ;;  %v1698_v1 = vld [vmem:[%s2125_s26 + $0x201] sm:$0xff] }
  0x30   : > { %1930 = vmatmul.mubr.msk.f32.gmra.mxu0 %vm213_vm0, %v2278_v36  ;;  %v1683_v2 = vld [vmem:[%s2125_s26 + $0x210] sm:$0xff]  ;;  %v1684_v4 = vld [vmem:[%s2125_s26 + $0x220] sm:$0xff] }
  0x31   : > { %1956 = vmatmul.mubr.msk.f32.gmra.mxu1 %vm213_vm0, %v2281_v37  ;;  %1960 = vmatprep.mubr.msk.f32.mxu0 %vm213_vm0, %v1669_v38  ;;  %v1699_v3 = vld [vmem:[%s2125_s26 + $0x211] sm:$0xff]  ;;  %v1700_v5 = vld [vmem:[%s2125_s26 + $0x221] sm:$0xff] }
  0x32   : > { %1986 = vmatprep.mubr.msk.f32.mxu1 %vm213_vm0, %v1685_v39 }
  0x34   : > { %1961 = vmatmul.mubr.msk.f32.vlgmr.msra.gmra.mxu0 %vm213_vm0, %v1670_v40 }
  0x35   : > { %1987 = vmatmul.mubr.msk.f32.vlgmr.msra.gmra.mxu1 %vm213_vm0, %v1686_v41  ;;  %2011 = vmatpush3.msra.mxu0 %v2150_v10 }
  0x36   : > { %2037 = vmatpush3.msra.mxu1 %v2155_v11  ;;  %1963 = vmatprep.mubr.msk.f32.mxu0 %vm213_vm0, %v1671_v42 }
  0x37   : > { %1989 = vmatprep.mubr.msk.f32.mxu1 %vm213_vm0, %v1687_v43 }
  0x38   : > { %1964 = vmatmul.mubr.msk.f32.gmra.mxu0 %vm213_vm0, %v1672_v44 }
  0x39   : > { %1990 = vmatmul.mubr.msk.f32.gmra.mxu1 %vm213_vm0, %v1688_v45  ;;  %1966 = vmatprep.mubr.msk.f32.mxu0 %vm213_vm0, %v1673_v46 }
  0x3a   : > { %1992 = vmatprep.mubr.msk.f32.mxu1 %vm213_vm0, %v1689_v47 }
  0x3c   : > { %1967 = vmatmul.mubr.msk.f32.gmra.mxu0 %vm213_vm0, %v1674_v48 }
  0x3d   : > { %1993 = vmatmul.mubr.msk.f32.gmra.mxu1 %vm213_vm0, %v1690_v49  ;;  %1969 = vmatprep.mubr.msk.f32.mxu0 %vm213_vm0, %v1675_v50 }
  0x3e   : > { %1995 = vmatprep.mubr.msk.f32.mxu1 %vm213_vm0, %v1691_v51 }
  0x40   : > { %1970 = vmatmul.mubr.msk.f32.gmra.mxu0 %vm213_vm0, %v1676_v52 }
  0x41   : > { %1996 = vmatmul.mubr.msk.f32.gmra.mxu1 %vm213_vm0, %v1692_v53  ;;  %1972 = vmatprep.mubr.msk.f32.mxu0 %vm213_vm0, %v1677_v54 }
  0x42   : > { %1998 = vmatprep.mubr.msk.f32.mxu1 %vm213_vm0, %v1693_v55 }
  0x44   : > { %1973 = vmatmul.mubr.msk.f32.gmra.mxu0 %vm213_vm0, %v1678_v56 }
  0x45   : > { %1999 = vmatmul.mubr.msk.f32.gmra.mxu1 %vm213_vm0, %v1694_v57  ;;  %1975 = vmatprep.mubr.msk.f32.mxu0 %vm213_vm0, %v1679_v58 }
  0x46   : > { %2001 = vmatprep.mubr.msk.f32.mxu1 %vm213_vm0, %v1695_v59 }
  0x48   : > { %1976 = vmatmul.mubr.msk.f32.gmra.mxu0 %vm213_vm0, %v1680_v60  ;;  %v2488_v60 = vld [vmem:[%s2625_s2] ss:$0 sm:$0xff] }
  0x49   : > { %2002 = vmatmul.mubr.msk.f32.gmra.mxu1 %vm213_vm0, %v1696_v61  ;;  %1978 = vmatprep.mubr.msk.f32.mxu0 %vm213_vm0, %v1681_v62 }
  0x4a   : > { %2004 = vmatprep.mubr.msk.f32.mxu1 %vm213_vm0, %v1697_v63 }
  0x4c   : > { %1979 = vmatmul.mubr.msk.f32.gmra.mxu0 %vm213_vm0, %v1682_v0 }
  0x4d   : > { %2005 = vmatmul.mubr.msk.f32.gmra.mxu1 %vm213_vm0, %v1698_v1  ;;  %1981 = vmatprep.mubr.msk.f32.mxu0 %vm213_vm0, %v1683_v2 }
  0x4e   : > { %2007 = vmatprep.mubr.msk.f32.mxu1 %vm213_vm0, %v1699_v3 }
  0x50   : > { %1982 = vmatmul.mubr.msk.f32.gmra.mxu0 %vm213_vm0, %v1684_v4 }
  0x51   : > { %2008 = vmatmul.mubr.msk.f32.gmra.mxu1 %vm213_vm0, %v1700_v5  ;;  %2012 = vmatprep.mubr.msk.f32.mxu0 %vm213_vm0, %v2130_v6  ;;  %v1742_v6 = vld [vmem:[%s2125_s26 + $0x80] sm:$0xff] }
  0x52   : > { %2038 = vmatprep.mubr.msk.f32.mxu1 %vm213_vm0, %v2135_v7  ;;  %v1758_v7 = vld [vmem:[%s2125_s26 + $0x81] sm:$0xff] }
  0x54   : > { %2013 = vmatmul.mubr.msk.f32.vlgmr.msra.gmra.mxu0 %vm213_vm0, %v2138_v8  ;;  %v1750_v8 = vld [vmem:[%s2125_s26 + $0x1a0] sm:$0xff] }
  0x55   : > { %2039 = vmatmul.mubr.msk.f32.vlgmr.msra.gmra.mxu1 %vm213_vm0, %v2141_v9  ;;  %2015 = vmatprep.mubr.msk.f32.mxu0 %vm213_vm0, %v2158_v12  ;;  %v1766_v9 = vld [vmem:[%s2125_s26 + $0x1a1] sm:$0xff] }
  0x56   : > { %2041 = vmatprep.mubr.msk.f32.mxu1 %vm213_vm0, %v2161_v13 }
  0x58   : > { %2016 = vmatmul.mubr.msk.f32.gmra.mxu0 %vm213_vm0, %v2168_v14 }
  0x59   : > { %2042 = vmatmul.mubr.msk.f32.gmra.mxu1 %vm213_vm0, %v2171_v15  ;;  %2018 = vmatprep.mubr.msk.f32.mxu0 %vm213_vm0, %v2184_v16 }
  0x5a   : > { %2044 = vmatprep.mubr.msk.f32.mxu1 %vm213_vm0, %v2187_v17 }
  0x5c   : > { %2019 = vmatmul.mubr.msk.f32.gmra.mxu0 %vm213_vm0, %v2190_v18 }
  0x5d   : > { %2045 = vmatmul.mubr.msk.f32.gmra.mxu1 %vm213_vm0, %v2193_v19  ;;  %2021 = vmatprep.mubr.msk.f32.mxu0 %vm213_vm0, %v2204_v20 }
  0x5e   : > { %2047 = vmatprep.mubr.msk.f32.mxu1 %vm213_vm0, %v2207_v21 }
  0x60   : > { %2022 = vmatmul.mubr.msk.f32.gmra.mxu0 %vm213_vm0, %v1742_v6 }
  0x61   : > { %2048 = vmatmul.mubr.msk.f32.gmra.mxu1 %vm213_vm0, %v1758_v7  ;;  %2024 = vmatprep.mubr.msk.f32.mxu0 %vm213_vm0, %v2218_v24 }
  0x62   : > { %2050 = vmatprep.mubr.msk.f32.mxu1 %vm213_vm0, %v2221_v25 }
  0x64   : > { %2025 = vmatmul.mubr.msk.f32.gmra.mxu0 %vm213_vm0, %v2224_v26 }
  0x65   : > { %2051 = vmatmul.mubr.msk.f32.gmra.mxu1 %vm213_vm0, %v2227_v27  ;;  %2027 = vmatprep.mubr.msk.f32.mxu0 %vm213_vm0, %v2238_v28 }
  0x66   : > { %2053 = vmatprep.mubr.msk.f32.mxu1 %vm213_vm0, %v2241_v29 }
  0x68   : > { %2028 = vmatmul.mubr.msk.f32.gmra.mxu0 %vm213_vm0, %v2244_v30 }
  0x69   : > { %2054 = vmatmul.mubr.msk.f32.gmra.mxu1 %vm213_vm0, %v2247_v31  ;;  %2030 = vmatprep.mubr.msk.f32.mxu0 %vm213_vm0, %v2258_v32 }
  0x6a   : > { %2056 = vmatprep.mubr.msk.f32.mxu1 %vm213_vm0, %v2261_v33 }
  0x6c   : > { %2031 = vmatmul.mubr.msk.f32.gmra.mxu0 %vm213_vm0, %v2264_v34 }
  0x6d   : > { %2057 = vmatmul.mubr.msk.f32.gmra.mxu1 %vm213_vm0, %v2267_v35  ;;  %2033 = vmatprep.mubr.msk.f32.mxu0 %vm213_vm0, %v2278_v36 }
  0x6e   : > { %2059 = vmatprep.mubr.msk.f32.mxu1 %vm213_vm0, %v2281_v37 }
  0x70   : > { %2034 = vmatmul.mubr.msk.f32.gmra.mxu0 %vm213_vm0, %v1750_v8 }
  0x71   : > { %2060 = vmatmul.mubr.msk.f32.gmra.mxu1 %vm213_vm0, %v1766_v9 }
  0xd4   : > { %v1910_v10 = vpop.f32.mrf.mxu0 }
  0xd5   : > { %v1936_v11 = vpop.f32.mrf.mxu1  ;;  %v414_v1 = vadd.f32 %v1910_v10, %v2488_v60 }
  0xd6   : > { %v328_v12 = vpop.f32.mrf.mxu0 }
  0xd7   : > { %v545_v13 = vpop.f32.mrf.mxu1  ;;  %v413_v4 = vadd.f32 %v2488_v60, %v328_v12  ;;  %v625_v7 = vadd.f32 %v1936_v11, %v414_v1 }
  0xd8   : > { %v1913_v14 = vpop.f32.mrf.mxu0 }
  0xd9   : > { %v2417_v15 = vpop.f32.mrf.mxu1  ;;  %v416_v8 = vadd.f32 %v1913_v14, %v2488_v60 }
  0xda   : > { %v338_v16 = vpop.f32.mrf.mxu0 }
  0xdb   : > { %v2419_v17 = vpop.f32.mrf.mxu1  ;;  %v415_v10 = vadd.f32 %v2488_v60, %v338_v16  ;;  %v627_v12 = vadd.f32 %v2417_v15, %v416_v8 }
  0xdc   : > { %v2421_v18 = vpop.f32.mrf.mxu0 }
  0xdd   : > { %v2423_v19 = vpop.f32.mrf.mxu1  ;;  %v418_v11 = vadd.f32 %v2421_v18, %v2488_v60 }
  0xde   : > { %v2425_v20 = vpop.f32.mrf.mxu0 }
  0xdf   : > { %v2427_v21 = vpop.f32.mrf.mxu1  ;;  %v417_v14 = vadd.f32 %v2488_v60, %v2425_v20  ;;  %v629_v18 = vadd.f32 %v2423_v19, %v418_v11 }
  0xe0   : > { %v2429_v22 = vpop.f32.mrf.mxu0 }
  0xe1   : > { %v2431_v23 = vpop.f32.mrf.mxu1  ;;  %v628_v20 = vadd.f32 %v2427_v21, %v417_v14 }
  0xe2   : > { %v2433_v24 = vpop.f32.mrf.mxu0 }
  0xe3   : > { %v2435_v25 = vpop.f32.mrf.mxu1 }
  0xe4   : > { %v2437_v26 = vpop.f32.mrf.mxu0 }
  0xe5   : > { %v2439_v27 = vpop.f32.mrf.mxu1  ;;  %v422_v21 = vadd.f32 %v2437_v26, %v2488_v60 }
  0xe6   : > { %v2441_v28 = vpop.f32.mrf.mxu0 }
  0xe7   : > { %v2443_v29 = vpop.f32.mrf.mxu1 }
  0xe8   : > { %v2445_v30 = vpop.f32.mrf.mxu0 }
  0xe9   : > { %v2447_v31 = vpop.f32.mrf.mxu1 }
  0xea   : > { %v2449_v32 = vpop.f32.mrf.mxu0 }
  0xeb   : > { %v2451_v33 = vpop.f32.mrf.mxu1 }
  0xec   : > { %v2453_v34 = vpop.f32.mrf.mxu0 }
  0xed   : > { %v2455_v35 = vpop.f32.mrf.mxu1 }
  0xee   : > { %v2457_v36 = vpop.f32.mrf.mxu0 }
  0xef   : > { %v2459_v37 = vpop.f32.mrf.mxu1 }
  0xf0   : > { %v2461_v38 = vpop.f32.mrf.mxu0 }
  0xf1   : > { %v2463_v39 = vpop.f32.mrf.mxu1 }
  0xf2   : > { %2627 = vst [vmem:[#allocation2_spill] sm:$0xff] %v2463_v39  ;;  %v2465_v40 = vpop.f32.mrf.mxu0  ;;  %v624_v39 = vadd.f32 %v545_v13, %v413_v4  ;;  %v626_v13 = vadd.f32 %v2419_v17, %v415_v10  ;;  %v420_v4 = vadd.f32 %v2429_v22, %v2488_v60 }
  0xf3   : > { %2628 = vst [vmem:[#allocation3_spill] sm:$0xff] %v2465_v40  ;;  %v2467_v41 = vpop.f32.mrf.mxu1 }
  0xf4   : > { %2629 = vst [vmem:[#allocation4_spill] sm:$0xff] %v2467_v41  ;;  %v1962_v42 = vpop.f32.mrf.mxu0 }
  0xf5   : > { %v1988_v43 = vpop.f32.mrf.mxu1 }
  0xf6   : > { %v789_v44 = vpop.f32.mrf.mxu0 }
  0xf7   : > { %v1000_v45 = vpop.f32.mrf.mxu1  ;;  %v868_v1 = vadd.f32 %v789_v44, %v624_v39 }
  0xf8   : > { %v1965_v46 = vpop.f32.mrf.mxu0 }
  0xf9   : > { %v1991_v47 = vpop.f32.mrf.mxu1  ;;  %v1079_v39 = vadd.f32 %v1000_v45, %v868_v1 }
  0xfa   : > { %v799_v48 = vpop.f32.mrf.mxu0 }
  0xfb   : > { %v1010_v49 = vpop.f32.mrf.mxu1  ;;  %v870_v44 = vadd.f32 %v799_v48, %v626_v13  ;;  %v631_v48 = vadd.f32 %v2431_v23, %v420_v4 }
  0xfc   : > { %v1968_v50 = vpop.f32.mrf.mxu0 }
  0xfd   : > { %v2469_v51 = vpop.f32.mrf.mxu1  ;;  %v1081_v10 = vadd.f32 %v1010_v49, %v870_v44 }
  0xfe   : > { %v809_v52 = vpop.f32.mrf.mxu0 }
  0xff   : > { %v2471_v53 = vpop.f32.mrf.mxu1 }
 0x100   : > { %v2473_v54 = vpop.f32.mrf.mxu0 }
 0x101   : > { %v2475_v55 = vpop.f32.mrf.mxu1  ;;  %v875_v26 = vadd.f32 %v2473_v54, %v631_v48  ;;  %v428_v48 = vadd.f32 %v2461_v38, %v2488_v60 }
 0x102   : > { %v2477_v56 = vpop.f32.mrf.mxu0 }
 0x103   : > { %v2479_v57 = vpop.f32.mrf.mxu1 }
 0x104   : > { %v2481_v58 = vpop.f32.mrf.mxu0 }
 0x105   : > { %v2483_v59 = vpop.f32.mrf.mxu1 }
 0x106   : > { %v2490_v61 = vpop.f32.mrf.mxu0 }
 0x107   : > { %v2492_v62 = vpop.f32.mrf.mxu1 }
 0x108   : > { %v2494_v63 = vpop.f32.mrf.mxu0 }
 0x109   : > { %v2496_v0 = vpop.f32.mrf.mxu1 }
 0x10a   : > { %2630 = vst [vmem:[#allocation5_spill] sm:$0xff] %v2496_v0  ;;  %v2499_v2 = vpop.f32.mrf.mxu0  ;;  %v869_v0 = vadd.f32 %v1962_v42, %v625_v7  ;;  %v871_v42 = vadd.f32 %v1965_v46, %v627_v12  ;;  %v873_v46 = vadd.f32 %v1968_v50, %v629_v18  ;;  %v872_v12 = vadd.f32 %v809_v52, %v628_v20 }
 0x10b   : > { %v2501_v3 = vpop.f32.mrf.mxu1  ;;  %v421_v50 = vadd.f32 %v2488_v60, %v2441_v28 }
 0x10c   : > { %2631 = vst [vmem:[#allocation6_spill] sm:$0xff] %v2501_v3  ;;  %v2504_v5 = vpop.f32.mrf.mxu0  ;;  %v1080_v16 = vadd.f32 %v1988_v43, %v869_v0  ;;  %v1082_v43 = vadd.f32 %v1991_v47, %v871_v42  ;;  %v1084_v23 = vadd.f32 %v2469_v51, %v873_v46  ;;  %v424_v42 = vadd.f32 %v2445_v30, %v2488_v60 }
 0x10d   : > { %v2506_v6 = vpop.f32.mrf.mxu1  ;;  %v1083_v28 = vadd.f32 %v2471_v53, %v872_v12  ;;  %v1086_v30 = vadd.f32 %v2475_v55, %v875_v26 }
 0x10e   : > { %2632 = vst [vmem:[#allocation7_spill] sm:$0xff] %v2506_v6  ;;  %v2509_v9 = vpop.f32.mrf.mxu0  ;;  %v635_v44 = vadd.f32 %v2447_v31, %v424_v42 }
 0x10f   : > { %v2511_v41 = vpop.f32.mrf.mxu1 }
 0x110   : > { %2633 = vst [vmem:[#allocation8_spill] sm:$0xff] %v2511_v41  ;;  %v2514_v40 = vpop.f32.mrf.mxu0 }
 0x111   : > { %v2516_v3 = vpop.f32.mrf.mxu1 }
 0x112   : > { %v2523_v6 = vpop.f32.mrf.mxu0 }
 0x113   : > { %v2525_v41 = vpop.f32.mrf.mxu1  ;;  %v2638_v26 = vld [vmem:[#allocation6_spill] sm:$0xff] }
 0x114   : > { %2634 = vst [vmem:[#allocation9_spill] sm:$0xff] %v2525_v41  ;;  %v2014_v15 = vpop.f32.mrf.mxu0  ;;  %v419_v41 = vadd.f32 %v2488_v60, %v2433_v24 }
 0x115   : > { %v2040_v7 = vpop.f32.mrf.mxu1  ;;  %v1324_v8 = vadd.f32 %v2014_v15, %v1080_v16  ;;  %v633_v16 = vadd.f32 %v2439_v27, %v422_v21  ;;  %v632_v15 = vadd.f32 %v2443_v29, %v421_v50  ;;  %v2637_v50 = vld [vmem:[#allocation2_spill] sm:$0xff] }
 0x116   : > { %v1244_v17 = vpop.f32.mrf.mxu0  ;;  %v630_v47 = vadd.f32 %v2435_v25, %v419_v41 }
 0x117   : > { %v1455_v22 = vpop.f32.mrf.mxu1  ;;  %v1535_v19 = vadd.f32 %v2040_v7, %v1324_v8  ;;  %v1323_v45 = vadd.f32 %v1244_v17, %v1079_v39  ;;  %v423_v7 = vadd.f32 %v2488_v60, %v2449_v32  ;;  %v877_v39 = vadd.f32 %v2481_v58, %v633_v16  ;;  %v2639_v16 = vld [vmem:[#allocation4_spill] sm:$0xff] }
 0x118   : > { %v2017_v24 = vpop.f32.mrf.mxu0  ;;  %v874_v4 = vadd.f32 %v2477_v56, %v630_v47  ;;  %v426_v8 = vadd.f32 %v2453_v34, %v2488_v60  ;;  %v876_v17 = vadd.f32 %v2490_v61, %v632_v15 }
 0x119   : > { %v2043_v0 = vpop.f32.mrf.mxu1  ;;  %1552 = vst.msk [vmem:[%s2538_s9 + $0x8] sm:$0xff] %vm1550_vm1, %v1535_v19  ;;  %v1534_v11 = vadd.f32 %v1455_v22, %v1323_v45  ;;  %v1326_v1 = vadd.f32 %v2017_v24, %v1082_v43  ;;  %v634_v22 = vadd.f32 %v2451_v33, %v423_v7  ;;  %v425_v43 = vadd.f32 %v2488_v60, %v2457_v36  ;;  %v2641_v7 = vld [vmem:[#allocation8_spill] sm:$0xff] }
 0x11a   : > { %v1254_v14 = vpop.f32.mrf.mxu0  ;;  %v1085_v32 = vadd.f32 %v2479_v57, %v874_v4  ;;  %v1088_v34 = vadd.f32 %v2483_v59, %v877_v39  ;;  %v879_v19 = vadd.f32 %v2494_v63, %v635_v44  ;;  %v637_v45 = vadd.f32 %v2455_v35, %v426_v8 }
 0x11b   : > { %v1465_v13 = vpop.f32.mrf.mxu1  ;;  %1551 = vst.msk [vmem:[%s2538_s9] sm:$0xff] %vm1550_vm1, %v1534_v11  ;;  %v1537_v49 = vadd.f32 %v2043_v0, %v1326_v1  ;;  %v1325_v52 = vadd.f32 %v1254_v14, %v1081_v10  ;;  %v1087_v36 = vadd.f32 %v2492_v62, %v876_v17  ;;  %v878_v24 = vadd.f32 %v2499_v2, %v634_v22  ;;  %v2635_v10 = vld [vmem:[#allocation3_spill] sm:$0xff]  ;;  %v2636_v1 = vld [vmem:[#allocation5_spill] sm:$0xff] }
 0x11c   : > { %v2020_v25 = vpop.f32.mrf.mxu0  ;;  %v636_v0 = vadd.f32 %v2459_v37, %v425_v43  ;;  %v427_v12 = vadd.f32 %v2488_v60, %v2635_v10  ;;  %v1090_v38 = vadd.f32 %v2636_v1, %v879_v19  ;;  %v881_v47 = vadd.f32 %v2504_v5, %v637_v45 }
 0x11d   : > { %v2046_v41 = vpop.f32.mrf.mxu1  ;;  %1554 = vst.msk [vmem:[%s2538_s9 + $0x18] sm:$0xff] %vm1550_vm1, %v1537_v49  ;;  %v1536_v51 = vadd.f32 %v1465_v13, %v1325_v52  ;;  %v1328_v54 = vadd.f32 %v2020_v25, %v1084_v23  ;;  %v639_v14 = vadd.f32 %v2637_v50, %v428_v48  ;;  %v1089_v37 = vadd.f32 %v2638_v26, %v878_v24 }
 0x11e   : > { %v1264_v27 = vpop.f32.mrf.mxu0  ;;  %v880_v49 = vadd.f32 %v2509_v9, %v636_v0  ;;  %v638_v5 = vadd.f32 %v2639_v16, %v427_v12 }
 0x11f   : > { %v1475_v18 = vpop.f32.mrf.mxu1  ;;  %1553 = vst.msk [vmem:[%s2538_s9 + $0x10] sm:$0xff] %vm1550_vm1, %v1536_v51  ;;  %v1539_v53 = vadd.f32 %v2046_v41, %v1328_v54  ;;  %v1327_v56 = vadd.f32 %v1264_v27, %v1083_v28  ;;  %v2640_v41 = vld [vmem:[#allocation7_spill] sm:$0xff]  ;;  %v883_v4 = vadd.f32 %v2514_v40, %v639_v14 }
 0x120   : > { %v2023_v29 = vpop.f32.mrf.mxu0  ;;  %v1092_v28 = vadd.f32 %v2640_v41, %v881_v47  ;;  %v1091_v27 = vadd.f32 %v2641_v7, %v880_v49 }
 0x121   : > { %v2049_v20 = vpop.f32.mrf.mxu1  ;;  %1556 = vst.msk [vmem:[%s2538_s9 + $0x28] sm:$0xff] %vm1550_vm1, %v1539_v53  ;;  %v1538_v55 = vadd.f32 %v1475_v18, %v1327_v56  ;;  %v1330_v58 = vadd.f32 %v2023_v29, %v1086_v30  ;;  %v882_v18 = vadd.f32 %v2523_v6, %v638_v5  ;;  %v1094_v40 = vadd.f32 %v2516_v3, %v883_v4 }
 0x122   : > { %v1274_v31 = vpop.f32.mrf.mxu0 }
 0x123   : > { %v1485_v46 = vpop.f32.mrf.mxu1  ;;  %1555 = vst.msk [vmem:[%s2538_s9 + $0x20] sm:$0xff] %vm1550_vm1, %v1538_v55  ;;  %v1541_v57 = vadd.f32 %v2049_v20, %v1330_v58  ;;  %v1329_v61 = vadd.f32 %v1274_v31, %v1085_v32  ;;  %v2642_v32 = vld [vmem:[#allocation9_spill] sm:$0xff] }
 0x124   : > { %v2026_v33 = vpop.f32.mrf.mxu0  ;;  %v1093_v17 = vadd.f32 %v2642_v32, %v882_v18 }
 0x125   : > { %v2052_v21 = vpop.f32.mrf.mxu1  ;;  %1558 = vst.msk [vmem:[%s2538_s9 + $0x38] sm:$0xff] %vm1550_vm1, %v1541_v57  ;;  %v1540_v59 = vadd.f32 %v1485_v46, %v1329_v61  ;;  %v1332_v63 = vadd.f32 %v2026_v33, %v1088_v34 }
 0x126   : > { %v1284_v35 = vpop.f32.mrf.mxu0 }
 0x127   : > { %v1495_v11 = vpop.f32.mrf.mxu1  ;;  %1557 = vst.msk [vmem:[%s2538_s9 + $0x30] sm:$0xff] %vm1550_vm1, %v1540_v59  ;;  %v1543_v62 = vadd.f32 %v2052_v21, %v1332_v63  ;;  %v1331_v2 = vadd.f32 %v1284_v35, %v1087_v36 }
 0x128   : > { %v2029_v13 = vpop.f32.mrf.mxu0 }
 0x129   : > { %v2055_v23 = vpop.f32.mrf.mxu1  ;;  %1560 = vst.msk [vmem:[%s2538_s9 + $0x48] sm:$0xff] %vm1550_vm1, %v1543_v62  ;;  %v1542_v60 = vadd.f32 %v1495_v11, %v1331_v2  ;;  %v1334_v52 = vadd.f32 %v2029_v13, %v1090_v38 }
 0x12a   : > { %v1294_v42 = vpop.f32.mrf.mxu0 }
 0x12b   : > { %v1505_v25 = vpop.f32.mrf.mxu1  ;;  %1559 = vst.msk [vmem:[%s2538_s9 + $0x40] sm:$0xff] %vm1550_vm1, %v1542_v60  ;;  %v1545_v51 = vadd.f32 %v2055_v23, %v1334_v52  ;;  %v1333_v54 = vadd.f32 %v1294_v42, %v1089_v37 }
 0x12c   : > { %v2032_v15 = vpop.f32.mrf.mxu0 }
 0x12d   : > { %v2058_v9 = vpop.f32.mrf.mxu1  ;;  %1562 = vst.msk [vmem:[%s2538_s9 + $0x58] sm:$0xff] %vm1550_vm1, %v1545_v51  ;;  %v1544_v30 = vadd.f32 %v1505_v25, %v1333_v54  ;;  %v1336_v39 = vadd.f32 %v2032_v15, %v1092_v28 }
 0x12e   : > { %v1304_v53 = vpop.f32.mrf.mxu0 }
 0x12f   : > { %v1515_v56 = vpop.f32.mrf.mxu1  ;;  %1561 = vst.msk [vmem:[%s2538_s9 + $0x50] sm:$0xff] %vm1550_vm1, %v1544_v30  ;;  %v1547_v44 = vadd.f32 %v2058_v9, %v1336_v39  ;;  %v1335_v8 = vadd.f32 %v1304_v53, %v1091_v27 }
 0x130   : > { %v2035_v29 = vpop.f32.mrf.mxu0 }
 0x131   : > { %v2061_v20 = vpop.f32.mrf.mxu1  ;;  %1564 = vst.msk [vmem:[%s2538_s9 + $0x68] sm:$0xff] %vm1550_vm1, %v1547_v44  ;;  %v1546_v6 = vadd.f32 %v1515_v56, %v1335_v8  ;;  %v1338_v55 = vadd.f32 %v2035_v29, %v1094_v40 }
 0x132   : > { %v1314_v58 = vpop.f32.mrf.mxu0 }
 0x133   : > { %1563 = vst.msk [vmem:[%s2538_s9 + $0x60] sm:$0xff] %vm1550_vm1, %v1546_v6  ;;  %v1549_v22 = vadd.f32 %v2061_v20, %v1338_v55  ;;  %v1337_v43 = vadd.f32 %v1314_v58, %v1093_v17  ;;  %v1525_v31 = vpop.f32.mrf.mxu1 }
 0x135   : > { %1566 = vst.msk [vmem:[%s2538_s9 + $0x78] sm:$0xff] %vm1550_vm1, %v1549_v22  ;;  %v1548_v3 = vadd.f32 %v1525_v31, %v1337_v43 }
 0x137   : > { %1565 = vst.msk [vmem:[%s2538_s9 + $0x70] sm:$0xff] %vm1550_vm1, %v1548_v3 }
 0x138 PF: > { %s13_s12 = sadd.s32 1, %s2077_s12  }
 0x139   : > { %p10_p4 = scmp.ge.s32.totalorder %s13_s12, 4  }
 0x13b   :  { %12 = sbr.rel (!%p10_p4) target bundleno = 1 (0x1), region = 69 }

</bundles_post_ra>
